<compile_context>
chip_gen: v5e
topology: v5e:2x2
jax: 0.10.0
libtpu: 0.0.40
codegen_flags: <defaults>
</compile_context>

<pallas_src>
import functools

import jax
import jax.numpy as jnp
from jax.experimental import pallas as pl
from jax.experimental.pallas import tpu as pltpu


def _focal_partials(x, *, gamma, threshold, valid=None):
    """Per-tile partial sums.

    x: (C, T) tile in the input's native dtype (classes on sublanes, rows on
    lanes).  Returns ((1,1) loss_sum, (1,1) count_sum), both f32.
    """
    # Class max over the sublane axis -> lane-dense (1, T); upcast after reduce.
    p = jnp.max(x, axis=0, keepdims=True).astype(jnp.float32)        # (1, T)
    if valid is not None:
        # Invalid lanes (edge/overshoot tiles): clamp to 1.0 -> deselected and
        # log(1) = 0, so no NaN/Inf is ever produced.
        p = jnp.where(valid, p, 1.0)
    # Mirror PyTorch exactly: value = where(p > thr, p, 1); selected iff value != 1.
    value = jnp.where(p > threshold, p, 1.0)
    sel = value != 1.0
    log_p = jnp.log(p)
    if gamma == 0:
        loss_el = -log_p
    elif float(gamma).is_integer():
        # integer_pow -> plain VPU multiplies (no transcendental pow needed).
        loss_el = -((1.0 - p) ** int(gamma)) * log_p
    else:
        loss_el = -jnp.power(1.0 - p, float(gamma)) * log_p
    loss_sum = jnp.sum(jnp.where(sel, loss_el, 0.0), keepdims=True)   # (1, 1)
    cnt_sum = jnp.sum(jnp.where(sel, 1.0, 0.0), keepdims=True)        # (1, 1)
    return loss_sum, cnt_sum


def _focal_single_kernel(x_ref, out_ref, *, gamma, threshold, size_average):
    """Small-R path: one grid step, no scratch, writes the final scalar."""
    loss_sum, cnt_sum = _focal_partials(x_ref[...], gamma=gamma, threshold=threshold)
    if size_average:
        out_ref[...] = loss_sum / cnt_sum
    else:
        out_ref[...] = loss_sum


def _focal_tiled_kernel(x_ref, loss_ref, cnt_ref, acc_loss, acc_cnt, *,
                        gamma, threshold, num_rows, row_tile,
                        tiles_per_split, needs_mask):
    """Large-R path: grid = (num_splits, tiles_per_split)."""
    t = pl.program_id(1)

    @pl.when(t == 0)
    def _init():
        acc_loss[...] = jnp.zeros_like(acc_loss)
        acc_cnt[...] = jnp.zeros_like(acc_cnt)

    valid = None
    if needs_mask:
        s = pl.program_id(0)
        g = s * tiles_per_split + t                       # global tile index
        rows_remaining = num_rows - g * row_tile          # may be <= 0 (overshoot)
        lane_ids = jax.lax.broadcasted_iota(jnp.int32, (1, row_tile), 1)
        valid = lane_ids < rows_remaining

    loss_sum, cnt_sum = _focal_partials(x_ref[...], gamma=gamma,
                                        threshold=threshold, valid=valid)
    acc_loss[...] += loss_sum
    acc_cnt[...] += cnt_sum

    @pl.when(t == tiles_per_split - 1)
    def _finalize():
        loss_ref[...] = acc_loss[...]
        cnt_ref[...] = acc_cnt[...]


def focal_pseudo_loss(inputs, *, gamma=2, threshold=0.8, size_average=True,
                      row_tile=4096, num_splits=None, single_tile_max_rows=4096):
    """FocalPseudo forward.

    inputs: (N, R, C) class probabilities in any float dtype (PyTorch layout),
            or (C, R) already-transposed class-major batch-0 slice.
    Returns a scalar f32 loss.
    """
    if inputs.ndim == 3:
        _, r, c = inputs.shape
        # Lane-dense layout: classes on sublanes, rows on lanes.
        x_t = jnp.transpose(inputs[0])                    # (C, R), native dtype
    else:
        c, r = inputs.shape                               # already (C, R)
        x_t = inputs

    if r <= single_tile_max_rows:
        # ---- small-R path: single grid step ----
        kernel = functools.partial(_focal_single_kernel, gamma=gamma,
                                   threshold=threshold, size_average=size_average)
        out = pl.pallas_call(
            kernel,
            out_shape=jax.ShapeDtypeStruct((1, 1), jnp.float32),
            grid_spec=pltpu.PrefetchScalarGridSpec(
                num_scalar_prefetch=0,
                grid=(1,),
                in_specs=[pl.BlockSpec((c, r), lambda i: (0, 0))],
                out_specs=pl.BlockSpec((1, 1), lambda i: (0, 0)),
            ),
        )(x_t)
        return out[0, 0]

    # ---- large-R tiled path ----
    row_tile = max(128, (min(row_tile, r) // 128) * 128)  # 128-multiple lane tiles
    n_tiles = pl.cdiv(r, row_tile)
    if num_splits is None:
        num_splits = 2 if n_tiles >= 2 else 1             # v7x: one split per TC
    num_splits = max(1, min(num_splits, n_tiles))
    tiles_per_split = pl.cdiv(n_tiles, num_splits)
    total_tiles = num_splits * tiles_per_split
    needs_mask = (total_tiles * row_tile) != r

    kernel = functools.partial(
        _focal_tiled_kernel, gamma=gamma, threshold=threshold, num_rows=r,
        row_tile=row_tile, tiles_per_split=tiles_per_split, needs_mask=needs_mask)

    def x_index_map(s, t):
        # Clamp so overshoot tiles (n_tiles % num_splits != 0) re-read the last
        # valid block; their lanes are fully masked so they contribute zero.
        return (0, jnp.minimum(s * tiles_per_split + t, n_tiles - 1))

    loss_p, cnt_p = pl.pallas_call(
        kernel,
        out_shape=(jax.ShapeDtypeStruct((num_splits, 1, 1), jnp.float32),
                   jax.ShapeDtypeStruct((num_splits, 1, 1), jnp.float32)),
        grid_spec=pltpu.PrefetchScalarGridSpec(
            num_scalar_prefetch=0,
            grid=(num_splits, tiles_per_split),
            in_specs=[pl.BlockSpec((c, row_tile), x_index_map)],
            out_specs=[pl.BlockSpec((None, 1, 1), lambda s, t: (s, 0, 0)),
                       pl.BlockSpec((None, 1, 1), lambda s, t: (s, 0, 0))],
            scratch_shapes=[pltpu.VMEM((1, 1), jnp.float32),   # loss accumulator
                            pltpu.VMEM((1, 1), jnp.float32)],  # count accumulator
        ),
        compiler_params=pltpu.CompilerParams(
            dimension_semantics=("parallel", "arbitrary")),
    )(x_t)

    total_loss = jnp.sum(loss_p)
    if size_average:
        total_cnt = jnp.sum(cnt_p)
        return total_loss / total_cnt
    return total_loss


if __name__ == "__main__":
    GAMMA, THRESHOLD = 2, 0.8
    key = jax.random.PRNGKey(0)
    k1, k2 = jax.random.split(key)

    def reference(probs_f32, size_average=True):
        x0 = probs_f32[0]
        p = jnp.max(x0, axis=1)
        value = jnp.where(p > THRESHOLD, p, 1.0)
        sel = value != 1.0
        loss_el = -((1.0 - p) ** GAMMA) * jnp.log(p)
        tot = jnp.sum(jnp.where(sel, loss_el, 0.0))
        cnt = jnp.sum(sel.astype(jnp.float32))
        return (tot / cnt if size_average else tot), cnt

    # --- Small-R path (single grid step): detection-style scores,
    #     batch=2, 300 ROIs, 21 classes (Pascal-VOC style), f32. ---
    N, R, C = 2, 300, 21
    logits = 6.0 * jax.random.normal(k1, (N, R, C), dtype=jnp.float32)
    probs = jax.nn.softmax(logits, axis=-1)
    loss = focal_pseudo_loss(probs, gamma=GAMMA, threshold=THRESHOLD,
                             size_average=True)
    loss = jax.block_until_ready(loss)
    ref, cnt = reference(probs, True)
    assert cnt > 0, "test data must contain rows above the confidence threshold"
    assert loss.shape == ()
    assert jnp.allclose(loss, ref, atol=1e-6, rtol=1e-5), (loss, ref)

    # --- Large-R tiled path (multi-tile + 2-way parallel split + edge mask),
    #     native bf16 ingestion. ---
    N2, R2, C2 = 2, 20000, 21
    logits2 = 6.0 * jax.random.normal(k2, (N2, R2, C2), dtype=jnp.float32)
    probs2 = jax.nn.softmax(logits2, axis=-1).astype(jnp.bfloat16)
    loss2 = focal_pseudo_loss(probs2, gamma=GAMMA, threshold=THRESHOLD,
                              size_average=True, row_tile=4096)
    loss2_sum = focal_pseudo_loss(probs2, gamma=GAMMA, threshold=THRESHOLD,
                                  size_average=False, row_tile=4096)
    loss2, loss2_sum = jax.block_until_ready((loss2, loss2_sum))
    probs2_f32 = probs2.astype(jnp.float32)
    ref2, cnt2 = reference(probs2_f32, True)
    ref2_sum, _ = reference(probs2_f32, False)
    assert cnt2 > 0
    assert jnp.allclose(loss2, ref2, atol=1e-6, rtol=1e-4), (loss2, ref2)
    assert jnp.allclose(loss2_sum, ref2_sum, atol=1e-5, rtol=1e-4), (loss2_sum, ref2_sum)

    print("KERNEL_OK")
</pallas_src>

<mosaic_0001>
module attributes {stable_mosaic.version = 11 : i64} {
  func.func @_focal_single_kernel(%arg0: i32, %arg1: memref<21x300xf32, #tpu.memory_space<vmem>>, %arg2: memref<1x1xf32, #tpu.memory_space<vmem>>) attributes {dimension_semantics = [#tpu.dimension_semantics<arbitrary>], iteration_bounds = array<i64: 1>, scalar_prefetch = 0 : i64, scratch_operands = 0 : i64, tpu.core_type = #tpu.core_type<tc>, window_params = [{pipeline_mode = #tpu.pipeline_mode<synchronous>, transform_indices = @transform_0, window_bounds = array<i64: 21, 300>}, {pipeline_mode = #tpu.pipeline_mode<synchronous>, transform_indices = @transform_1, window_bounds = array<i64: 1, 1>}]} {
    %c0 = arith.constant 0 : index
    %c0_0 = arith.constant 0 : index
    %0 = vector.load %arg1[%c0, %c0_0] : memref<21x300xf32, #tpu.memory_space<vmem>>, vector<21x300xf32>
    %cst = arith.constant dense<0xFF800000> : vector<300xf32>
    %1 = vector.multi_reduction <maximumf>, %0, %cst [0] : vector<21x300xf32> to vector<300xf32>
    %2 = vector.shape_cast %1 : vector<300xf32> to vector<1x300xf32>
    %cst_1 = arith.constant 8.000000e-01 : f32
    %3 = vector.broadcast %cst_1 : f32 to vector<1x300xf32>
    %4 = arith.cmpf ogt, %2, %3 : vector<1x300xf32>
    %cst_2 = arith.constant 1.000000e+00 : f32
    %5 = vector.broadcast %cst_2 : f32 to vector<1x300xf32>
    %6 = arith.select %4, %2, %5 : vector<1x300xi1>, vector<1x300xf32>
    %cst_3 = arith.constant 1.000000e+00 : f32
    %7 = vector.broadcast %cst_3 : f32 to vector<1x300xf32>
    %8 = arith.cmpf one, %6, %7 : vector<1x300xf32>
    %9 = math.log %2 : vector<1x300xf32>
    %cst_4 = arith.constant 1.000000e+00 : f32
    %10 = vector.broadcast %cst_4 : f32 to vector<1x300xf32>
    %11 = arith.subf %10, %2 : vector<1x300xf32>
    %12 = arith.mulf %11, %11 : vector<1x300xf32>
    %cst_5 = arith.constant 0.000000e+00 : f32
    %13 = vector.broadcast %cst_5 : f32 to vector<1x300xf32>
    %14 = arith.subf %13, %12 : vector<1x300xf32>
    %15 = arith.mulf %14, %9 : vector<1x300xf32>
    %cst_6 = arith.constant 0.000000e+00 : f32
    %16 = vector.broadcast %cst_6 : f32 to vector<1x300xf32>
    %17 = arith.select %8, %15, %16 : vector<1x300xi1>, vector<1x300xf32>
    %18 = vector.shape_cast %17 : vector<1x300xf32> to vector<1x1x300xf32>
    %cst_7 = arith.constant dense<0.000000e+00> : vector<1xf32>
    %19 = vector.multi_reduction <add>, %18, %cst_7 [1, 2] : vector<1x1x300xf32> to vector<1xf32>
    %20 = vector.shape_cast %19 : vector<1xf32> to vector<1x1x1xf32>
    %21 = vector.extract %20[0, 0, 0] : f32 from vector<1x1x1xf32>
    %22 = vector.broadcast %21 : f32 to vector<1x1xf32>
    %cst_8 = arith.constant 1.000000e+00 : f32
    %cst_9 = arith.constant 0.000000e+00 : f32
    %23 = vector.broadcast %cst_8 : f32 to vector<1x300xf32>
    %24 = vector.broadcast %cst_9 : f32 to vector<1x300xf32>
    %25 = arith.select %8, %23, %24 : vector<1x300xi1>, vector<1x300xf32>
    %26 = vector.shape_cast %25 : vector<1x300xf32> to vector<1x1x300xf32>
    %cst_10 = arith.constant dense<0.000000e+00> : vector<1xf32>
    %27 = vector.multi_reduction <add>, %26, %cst_10 [1, 2] : vector<1x1x300xf32> to vector<1xf32>
    %28 = vector.shape_cast %27 : vector<1xf32> to vector<1x1x1xf32>
    %29 = vector.extract %28[0, 0, 0] : f32 from vector<1x1x1xf32>
    %30 = vector.broadcast %29 : f32 to vector<1x1xf32>
    %31 = arith.divf %22, %30 : vector<1x1xf32>
    %c0_11 = arith.constant 0 : index
    %c0_12 = arith.constant 0 : index
    %32 = vector.load %arg2[%c0_11, %c0_12] : memref<1x1xf32, #tpu.memory_space<vmem>>, vector<1x1xf32>
    tpu.vector_store %arg2[%c0_11, %c0_12], %31 {strides = array<i32>} : memref<1x1xf32, #tpu.memory_space<vmem>>, vector<1x1xf32>,
    return
  }
  func.func @transform_0(%arg0: i32) -> (i32, i32) {
    %c0_i32 = arith.constant 0 : i32
    %c0_i32_0 = arith.constant 0 : i32
    %c0_i32_1 = arith.constant 0 : i32
    return %c0_i32, %c0_i32_0 : i32, i32
  }
  func.func @transform_1(%arg0: i32) -> (i32, i32) {
    %c0_i32 = arith.constant 0 : i32
    %c0_i32_0 = arith.constant 0 : i32
    %c0_i32_1 = arith.constant 0 : i32
    return %c0_i32, %c0_i32_0 : i32, i32
  }
}

</mosaic_0001>

<bundles_post_ra>
// kernel: tpu_custom_call.1
= control target key start
LH: loop header
LB: loop body
LE: loop exit
PB: predicated region body
PF: predicated region fallthrough
CT: control target
= control target key end

     0   :  { %6 = vsyncpa [#allocation3], 0  ;;  %s263_s0 = inlined_call_operand.hbm [shape: f32[21,300], index: 0, kind: input, shape index: {}]   ;;  %s264_s1 = inlined_call_operand.hbm [shape: f32[1,1], index: 1, kind: output, shape index: {}]  }
   0x1   :  { %7 = vsyncpa [#allocation4], 0  ;;  %s12_s8 = sshll.u32 %s263_s0, 4  ;;  %s234_s9 = smov [#allocation2]   ;;  %s13_s8 = int_to_ptr.hbm [resolvable:$true] %s12_s8 }
   0x2   :  { %s14_s10 = sshll.u32 %s234_s9, 4  ;;  %s235_s11 = smov 384   ;;  %s15_s10 = int_to_ptr.vmem [resolvable:$true] %s14_s10 }
   0x3   :  { %s236_s12 = smov 24  }
   0x4   :  { %20 = dma.hbm_to_vmem [thread:$0]  %s13_s8, 1152, %s15_s10, [#allocation3], %s235_s11, %s235_s11, %s236_s12  }
   0x5   :  { %230 = dma.done.wait [#allocation3], 1152  }
   0x6   :  { %231 = vsyncadd [#allocation3], 4294966144  ;;  %vm53_vm0 = vcmask 359424   ;;  %v27_v0 = vld [vmem:[#allocation2 + $0x10] sm:$0xff]  ;;  %vm34_vm1 = vcmask 1044480   ;;  %vm56_vm2 = vcmask 356352  }
   0x7   :  { %v25_v1 = vld [vmem:[#allocation2] sm:$0xff]  ;;  %v26_v2 = vld [vmem:[#allocation2 + $0x8] sm:$0xff]  ;;  %v54_v4 = vsel %vm53_vm0, %v27_v0, -inf  ;;  %v31_v5 = vld [vmem:[#allocation2 + $0x30] sm:$0x1f]  ;;  %vm96_vm7 = vcmask 1040384  }
   0x8   :  { %v30_v3 = vld [vmem:[#allocation2 + $0x28] sm:$0xff]  ;;  %v32_v6 = vld [vmem:[#allocation2 + $0x38] sm:$0x1f]  ;;  %v33_v7 = vld [vmem:[#allocation2 + $0x40] sm:$0x1f]  ;;  %v35_v10 = vsel %vm34_vm1, %v31_v5, -inf }
   0x9   :  { %v28_v8 = vld [vmem:[#allocation2 + $0x18] sm:$0xff]  ;;  %v29_v9 = vld [vmem:[#allocation2 + $0x20] sm:$0xff]  ;;  %v44_v11 = vsel %vm34_vm1, %v32_v6, -inf  ;;  %v55_v12 = vsel %vm53_vm0, %v30_v3, -inf  ;;  %v57_v13 = vsel %vm56_vm2, %v33_v7, -inf  ;;  %v36_v14 = vmax.f32 %v25_v1, %v35_v10  ;;  %s238_s14 = smov [#allocation5]  }
   0xa   :  { %v45_v15 = vmax.f32 %v26_v2, %v44_v11  ;;  %v58_v16 = vmax.f32 %v54_v4, %v57_v13  ;;  %vm100_vm10 = vcmask 352256   ;;  %v237_v62 = vmov 0.0   ;;  %s153_s15 = sshll.u32 %s238_s14, 4  ;;  %s155_s18 = sshll.u32 %s264_s1, 4  ;;  %s154_s15 = int_to_ptr.vmem [resolvable:$true] %s153_s15  ;;  %s156_s18 = int_to_ptr.hbm [resolvable:$true] %s155_s18 }
   0xb   :  { %v37_v17 = vmax.f32 %v36_v14, %v28_v8  ;;  %vm146_vm15 = vcmask 0  }
   0xc   :  { %v46_v18 = vmax.f32 %v45_v15, %v29_v9  ;;  %v59_v19 = vmax.f32 %v58_v16, %v55_v12 }
   0xd   :  { %v38_v20 = vrot.slane %v37_v17, 4 }
   0xe   :  { %v47_v21 = vrot.slane %v46_v18, 4  ;;  %v60_v22 = vrot.slane %v59_v19, 4 }
   0xf   :  { %v39_v23 = vmax.f32 %v37_v17, %v38_v20 }
  0x10   :  { %v48_v24 = vmax.f32 %v46_v18, %v47_v21  ;;  %v61_v25 = vmax.f32 %v59_v19, %v60_v22 }
  0x11   :  { %v40_v26 = vrot.slane %v39_v23, 2 }
  0x12   :  { %v49_v27 = vrot.slane %v48_v24, 2  ;;  %v62_v28 = vrot.slane %v61_v25, 2 }
  0x13   :  { %v41_v29 = vmax.f32 %v39_v23, %v40_v26 }
  0x14   :  { %v50_v30 = vmax.f32 %v48_v24, %v49_v27  ;;  %v63_v31 = vmax.f32 %v61_v25, %v62_v28 }
  0x15   :  { %v42_v32 = vrot.slane %v41_v29, 1 }
  0x16   :  { %v51_v33 = vrot.slane %v50_v30, 1  ;;  %v64_v34 = vrot.slane %v63_v31, 1 }
  0x17   :  { %v43_v35 = vmax.f32 %v41_v29, %v42_v32 }
  0x18   :  { %v52_v36 = vmax.f32 %v50_v30, %v51_v33  ;;  %v65_v37 = vmax.f32 %v63_v31, %v64_v34 }
  0x19   :  { %174 = vlog2.f32 %v43_v35  ;;  %vm66_vm3 = vcmp.gt.f32.partialorder %v43_v35, 0.8  ;;  %v81_v38 = vsub.f32 1.0, %v43_v35 }
  0x1a   :  { %176 = vlog2.f32 %v52_v36  ;;  %vm67_vm4 = vcmp.gt.f32.partialorder %v52_v36, 0.8  ;;  %vm68_vm5 = vcmp.gt.f32.partialorder %v65_v37, 0.8  ;;  %v82_v39 = vsub.f32 1.0, %v52_v36 }
  0x1b   :  { %178 = vlog2.f32 %v65_v37  ;;  %v83_v40 = vsub.f32 1.0, %v65_v37  ;;  %v69_v41 = vsel %vm66_vm3, %v43_v35, 1.0  ;;  %v84_v42 = vmul.f32 %v81_v38, %v81_v38 }
  0x1c   :  { %v85_v43 = vmul.f32 %v82_v39, %v82_v39  ;;  %v70_v46 = vsel %vm67_vm4, %v52_v36, 1.0  ;;  %v71_v47 = vsel %vm68_vm5, %v65_v37, 1.0  ;;  %vm72_vm6 = vcmp.ne.f32.partialorder %v69_v41, 1.0 }
  0x1d   :  { %v86_v44 = vmul.f32 %v83_v40, %v83_v40  ;;  %v87_v50 = vsub.f32 0.0, %v84_v42  ;;  %vm73_vm8 = vcmp.ne.f32.partialorder %v70_v46, 1.0  ;;  %vm74_vm9 = vcmp.ne.f32.partialorder %v71_v47, 1.0 }
  0x1e   :  { %v88_v51 = vsub.f32 0.0, %v85_v43  ;;  %v113_v63 = vsel %vm72_vm6, 1.0, %v237_v62  ;;  %v114_v0 = vsel %vm73_vm8, 1.0, %v237_v62  ;;  %v115_v8 = vsel %vm74_vm9, 1.0, %v237_v62 }
  0x1f   :  { %v175_v45 = vpop.eup %174  ;;  %v89_v52 = vsub.f32 0.0, %v86_v44  ;;  %v116_v5 = vsel %vm96_vm7, %v113_v63, 0.0  ;;  %v117_v6 = vsel %vm96_vm7, %v114_v0, 0.0  ;;  %v119_v10 = vsel %vm100_vm10, %v115_v8, 0.0 }
  0x20   :  { %v177_v48 = vpop.eup %176  ;;  %v76_v49 = vmul.f32 0.6931472, %v175_v45  ;;  %v118_v9 = vadd.f32 %v117_v6, %v116_v5 }
  0x21   :  { %v179_v53 = vpop.eup %178  ;;  %v78_v54 = vmul.f32 0.6931472, %v177_v48 }
  0x22   :  { %v80_v55 = vmul.f32 0.6931472, %v179_v53  ;;  %v90_v56 = vmul.f32 %v87_v50, %v76_v49  ;;  %v120_v11 = vadd.f32 %v119_v10, %v118_v9 }
  0x23   :  { %v91_v57 = vmul.f32 %v88_v51, %v78_v54 }
  0x24   :  { %v92_v58 = vmul.f32 %v89_v52, %v80_v55  ;;  %v93_v59 = vsel %vm72_vm6, %v90_v56, 0.0 }
  0x25   :  { %v94_v60 = vsel %vm73_vm8, %v91_v57, 0.0  ;;  %v97_v61 = vsel %vm96_vm7, %v93_v59, 0.0 }
  0x26   :  { %v95_v1 = vsel %vm74_vm9, %v92_v58, 0.0  ;;  %v98_v2 = vsel %vm96_vm7, %v94_v60, 0.0 }
  0x27   :  { %v99_v3 = vadd.f32 %v98_v2, %v97_v61  ;;  %v101_v4 = vsel %vm100_vm10, %v95_v1, 0.0 }
  0x29   :  { %v102_v7 = vadd.f32 %v101_v4, %v99_v3 }
  0x2b   :  { %103 = vadd.xlane.f32.xlu0 %v102_v7 }
  0x33   :  { %121 = vadd.xlane.f32.xlu0 %v120_v11 }
  0x9e   :  { %v104_v12 = vpop.xlane.xlu0 %103 }
  0x9f   :  { %v105_v13 = vrot.slane %v104_v12, 4 }
  0xa1   :  { %v106_v14 = vadd.f32 %v105_v13, %v104_v12 }
  0xa3   :  { %v107_v15 = vrot.slane %v106_v14, 2 }
  0xa5   :  { %v108_v16 = vadd.f32 %v107_v15, %v106_v14 }
  0xa6   :  { %v122_v17 = vpop.xlane.xlu0 %121 }
  0xa7   :  { %v123_v18 = vrot.slane %v122_v17, 4  ;;  %v109_v19 = vrot.slane %v108_v16, 1 }
  0xa9   :  { %v124_v20 = vadd.f32 %v123_v18, %v122_v17  ;;  %v110_v21 = vadd.f32 %v109_v19, %v108_v16 }
  0xab   :  { %v125_v22 = vrot.slane %v124_v20, 2  ;;  %165 = vpush %v110_v21 }
  0xad   :  { %v126_v23 = vadd.f32 %v125_v22, %v124_v20 }
  0xaf   :  { %v127_v24 = vrot.slane %v126_v23, 1 }
  0xb1   :  { %v128_v25 = vadd.f32 %v127_v24, %v126_v23 }
  0xb3   :  { %167 = vpush %v128_v25 }
  0xdc   :  { %s166_s0 = spop %165 }
  0xdd   :  { %v112_v36 = vstv %s166_s0 }
  0xe4   :  { %s168_s13 = spop %167 }
  0xe5   :  { %v130_v26 = vstv %s168_s13 }
  0xe6   :  { %180 = vrcp.f32 %v130_v26  ;;  %v142_v30 = vand.u32 2147483648, %v130_v26  ;;  %v140_v32 = vand.u32 2147483647, %v130_v26  ;;  %vm136_vm12 = vweird.f32 %v130_v26 }
  0xe8   :  { %v143_v34 = vor.u32 1.1754944e-38, %v142_v30  ;;  %vm141_vm14 = vcmp.eq.f32.partialorder %v140_v32, 8.507059e+37 }
  0xec   :  { %v181_v27 = vpop.eup %180 }
  0xed   :  { %v132_v28 = vmul.f32 %v181_v27, %v130_v26  ;;  %vm137_vm11 = vweird.f32 %v181_v27 }
  0xee   :  { %vm138_vm13 = vmor %vm136_vm12, %vm137_vm11 }
  0xef   :  { %v133_v29 = vsub.f32 1.0, %v132_v28 }
  0xf1   :  { %v134_v31 = vmul.f32 %v181_v27, %v133_v29 }
  0xf3   :  { %v135_v33 = vadd.f32 %v181_v27, %v134_v31 }
  0xf5   :  { %v139_v35 = vsel %vm138_vm13, %v181_v27, %v135_v33 }
  0xf6   :  { %v144_v37 = vsel %vm141_vm14, %v143_v34, %v139_v35 }
  0xf7   :  { %v145_v38 = vmul.f32 %v144_v37, %v112_v36 }
  0xf9   :  { %147 = vst.msk [vmem:[#allocation5] sm:$0x1] %vm146_vm15, %v145_v38 }
  0xfa   :  { %158 = dma.vmem_to_hbm [thread:$0]  %s154_s15, 16, %s156_s18, [#allocation4]  }
  0xfb   :  { %232 = dma.done.wait [#allocation4], 16  }
  0xfc   :  { %233 = vsyncadd [#allocation4], 4294967280 }
  0xfd   :  { %163 = vsyncpa [#allocation3], 1 }
  0xfe   :  { %164 = vsyncpa [#allocation4], 1 }

</bundles_post_ra>
